<compile_context>
chip_gen: v6e
topology: v6e:2x2x1
jax: 0.10.0
libtpu: 0.0.40
codegen_flags: <defaults>
</compile_context>

<pallas_src>
import jax
import jax.numpy as jnp
from jax.experimental import pallas as pl
from jax.experimental.pallas import tpu as pltpu

NUM_CLASSES = 10
NPAD = 128  # lane-padded classifier width (multiple of 128 -> unmasked vst)


def mlp_kernel(x_ref, w0, b0, w1, b1, w2, b2, w3, b3, w4, b4, out_ref):
    """Fused 5-layer MLP forward for one batch tile.

    Matmul operands are bf16 (MXU-native), accumulation is f32,
    bias-add / ReLU happen in f32 (keeps the VPU off bf16 paths on v5e).
    """
    def layer(h_bf16, w_ref, b_ref, relu):
        acc = jnp.dot(h_bf16, w_ref[...], preferred_element_type=jnp.float32)
        acc = acc + b_ref[...]
        if relu:
            acc = jnp.maximum(acc, 0.0)
        return acc

    h = layer(x_ref[...], w0, b0, True).astype(jnp.bfloat16)
    h = layer(h, w1, b1, True).astype(jnp.bfloat16)
    h = layer(h, w2, b2, True).astype(jnp.bfloat16)
    h = layer(h, w3, b3, True).astype(jnp.bfloat16)
    out = layer(h, w4, b4, False)  # final layer: no ReLU (matches PyTorch forward)
    out_ref[...] = out.astype(out_ref.dtype)


def init_params(key, input_size, hidden_size, num_classes=NUM_CLASSES):
    """torch.nn.Linear-style init U(-1/sqrt(fan_in), 1/sqrt(fan_in)).

    Stored kernel-ready once (no per-forward transposes):
      W as (in_features, out_features) in bf16, b as (1, out_features) in f32.
    The classifier (fc4) is zero-padded to NPAD output lanes."""
    dims = [
        (input_size, hidden_size),   # fc0
        (hidden_size, hidden_size),  # fc1
        (hidden_size, hidden_size),  # fc2
        (hidden_size, hidden_size),  # fc3
        (hidden_size, num_classes),  # fc4
    ]
    params = []
    for li, (in_f, out_f) in enumerate(dims):
        key, kw, kb = jax.random.split(key, 3)
        bound = float(in_f) ** -0.5
        w = jax.random.uniform(kw, (in_f, out_f), jnp.float32, -bound, bound)
        b = jax.random.uniform(kb, (out_f,), jnp.float32, -bound, bound)
        if li == len(dims) - 1:  # pad classifier to lane-dense NPAD
            w = jnp.pad(w, ((0, 0), (0, NPAD - out_f)))
            b = jnp.pad(b, (0, NPAD - out_f))
        params.append((w.astype(jnp.bfloat16), b.reshape(1, -1)))  # bias stays f32
    return params


def three_feedforward(x, params, *, tm=None):
    """x: [B, C, H, W] float32 (NCHW). Returns logits [B, 10] in float32."""
    B = x.shape[0]
    x_flat = x.reshape(B, -1).astype(jnp.bfloat16)  # torch.flatten(x, start_dim=1)
    D = x_flat.shape[1]

    # Batch tile: 256 fills v6e/v7x MXU rows; 128 is enough on v5e / tiny batches.
    if tm is None:
        tm = 256 if B >= 256 else 128
    b_pad = ((B + tm - 1) // tm) * tm
    if b_pad != B:
        x_flat = jnp.pad(x_flat, ((0, b_pad - B), (0, 0)))

    grid = (b_pad // tm,)

    # x / out tiled over batch; weights & biases VMEM-resident across the grid.
    in_specs = [pl.BlockSpec((tm, D), lambda i: (i, 0))]
    flat_args = []
    for (w, b) in params:
        flat_args += [w, b]
        in_specs += [pl.BlockSpec(w.shape, lambda i: (0, 0)),
                     pl.BlockSpec(b.shape, lambda i: (0, 0))]

    hidden = params[1][0].shape[0]
    flops = 2 * b_pad * (D * hidden + 3 * hidden * hidden + hidden * NPAD)
    bytes_accessed = (x_flat.size * 2
                      + sum(w.size * 2 + b.size * 4 for (w, b) in params)
                      + b_pad * NPAD * 4)

    out = pl.pallas_call(
        mlp_kernel,
        grid=grid,
        out_shape=jax.ShapeDtypeStruct((b_pad, NPAD), jnp.float32),
        in_specs=in_specs,
        out_specs=pl.BlockSpec((tm, NPAD), lambda i: (i, 0)),
        compiler_params=pltpu.CompilerParams(
            dimension_semantics=("parallel",),        # shard batch tiles across TCs (v7x)
            vmem_limit_bytes=32 * 1024 * 1024,        # safe on v5e/v6e/v7x for these tiles
        ),
        cost_estimate=pl.CostEstimate(
            flops=flops, transcendentals=0, bytes_accessed=bytes_accessed),
    )(x_flat, *flat_args)

    return out[:B, :NUM_CLASSES]


def reference_forward(x, params):
    """Pure-JAX reference using the same bf16-operand / f32-accumulate recipe."""
    h = x.reshape(x.shape[0], -1).astype(jnp.bfloat16)
    for i, (w, b) in enumerate(params):
        h = jnp.dot(h, w, preferred_element_type=jnp.float32) + b
        if i < len(params) - 1:
            h = jnp.maximum(h, 0.0).astype(jnp.bfloat16)
    return h[:, :NUM_CLASSES]


if __name__ == "__main__":
    key = jax.random.PRNGKey(0)
    k_x, k_p = jax.random.split(key)

    # Small MNIST-like shapes: B=8, C=1, H=W=16 -> input_size=256, hidden=128.
    B, C, H, W = 8, 1, 16, 16
    input_size = C * H * W
    hidden_size = 128

    x = jax.random.normal(k_x, (B, C, H, W), dtype=jnp.float32)
    params = init_params(k_p, input_size, hidden_size)

    out = three_feedforward(x, params)
    out = jax.block_until_ready(out)

    ref = reference_forward(x, params)
    assert out.shape == (B, NUM_CLASSES), out.shape
    assert jnp.allclose(out, ref, atol=1e-3, rtol=1e-3), "mismatch vs reference"

    print("KERNEL_OK")
</pallas_src>

<mosaic_0001>
module attributes {stable_mosaic.version = 11 : i64} {
  func.func @mlp_kernel(%arg0: i32, %arg1: memref<128x256xbf16, #tpu.memory_space<vmem>>, %arg2: memref<256x128xbf16, #tpu.memory_space<vmem>>, %arg3: memref<1x128xf32, #tpu.memory_space<vmem>>, %arg4: memref<128x128xbf16, #tpu.memory_space<vmem>>, %arg5: memref<1x128xf32, #tpu.memory_space<vmem>>, %arg6: memref<128x128xbf16, #tpu.memory_space<vmem>>, %arg7: memref<1x128xf32, #tpu.memory_space<vmem>>, %arg8: memref<128x128xbf16, #tpu.memory_space<vmem>>, %arg9: memref<1x128xf32, #tpu.memory_space<vmem>>, %arg10: memref<128x128xbf16, #tpu.memory_space<vmem>>, %arg11: memref<1x128xf32, #tpu.memory_space<vmem>>, %arg12: memref<128x128xf32, #tpu.memory_space<vmem>>) attributes {dimension_semantics = [#tpu.dimension_semantics<parallel>], iteration_bounds = array<i64: 1>, scalar_prefetch = 0 : i64, scratch_operands = 0 : i64, tpu.core_type = #tpu.core_type<tc>, window_params = [{transform_indices = @transform_0, window_bounds = array<i64: 128, 256>}, {pipeline_mode = #tpu.pipeline_mode<synchronous>, transform_indices = @transform_1, window_bounds = array<i64: 256, 128>}, {pipeline_mode = #tpu.pipeline_mode<synchronous>, transform_indices = @transform_2, window_bounds = array<i64: 1, 128>}, {pipeline_mode = #tpu.pipeline_mode<synchronous>, transform_indices = @transform_3, window_bounds = array<i64: 128, 128>}, {pipeline_mode = #tpu.pipeline_mode<synchronous>, transform_indices = @transform_4, window_bounds = array<i64: 1, 128>}, {pipeline_mode = #tpu.pipeline_mode<synchronous>, transform_indices = @transform_5, window_bounds = array<i64: 128, 128>}, {pipeline_mode = #tpu.pipeline_mode<synchronous>, transform_indices = @transform_6, window_bounds = array<i64: 1, 128>}, {pipeline_mode = #tpu.pipeline_mode<synchronous>, transform_indices = @transform_7, window_bounds = array<i64: 128, 128>}, {pipeline_mode = #tpu.pipeline_mode<synchronous>, transform_indices = @transform_8, window_bounds = array<i64: 1, 128>}, {pipeline_mode = #tpu.pipeline_mode<synchronous>, transform_indices = @transform_9, window_bounds = array<i64: 128, 128>}, {pipeline_mode = #tpu.pipeline_mode<synchronous>, transform_indices = @transform_10, window_bounds = array<i64: 1, 128>}, {transform_indices = @transform_11, window_bounds = array<i64: 128, 128>}]} {
    %c0 = arith.constant 0 : index
    %c0_0 = arith.constant 0 : index
    %0 = vector.load %arg1[%c0, %c0_0] : memref<128x256xbf16, #tpu.memory_space<vmem>>, vector<128x256xbf16>
    %c0_1 = arith.constant 0 : index
    %c0_2 = arith.constant 0 : index
    %1 = vector.load %arg2[%c0_1, %c0_2] : memref<256x128xbf16, #tpu.memory_space<vmem>>, vector<256x128xbf16>
    %cst = arith.constant dense<0.000000e+00> : vector<128x128xf32>
    %2 = tpu.matmul %0, %1, %cst {dimension_numbers = #tpu.dot_dimension_numbers<[1], [0], [0], [1], [0, 0, 1, 1], [], []>} : vector<128x256xbf16>, vector<256x128xbf16>, vector<128x128xf32> -> vector<128x128xf32>
    %c0_3 = arith.constant 0 : index
    %c0_4 = arith.constant 0 : index
    %3 = vector.load %arg3[%c0_3, %c0_4] : memref<1x128xf32, #tpu.memory_space<vmem>>, vector<1x128xf32>
    %4 = vector.broadcast %3 : vector<1x128xf32> to vector<128x128xf32>
    %5 = arith.addf %2, %4 : vector<128x128xf32>
    %cst_5 = arith.constant 0.000000e+00 : f32
    %6 = vector.broadcast %cst_5 : f32 to vector<128x128xf32>
    %7 = arith.maximumf %5, %6 : vector<128x128xf32>
    %8 = arith.truncf %7 : vector<128x128xf32> to vector<128x128xbf16>
    %c0_6 = arith.constant 0 : index
    %c0_7 = arith.constant 0 : index
    %9 = vector.load %arg4[%c0_6, %c0_7] : memref<128x128xbf16, #tpu.memory_space<vmem>>, vector<128x128xbf16>
    %cst_8 = arith.constant dense<0.000000e+00> : vector<128x128xf32>
    %10 = tpu.matmul %8, %9, %cst_8 {dimension_numbers = #tpu.dot_dimension_numbers<[1], [0], [0], [1], [0, 0, 1, 1], [], []>} : vector<128x128xbf16>, vector<128x128xbf16>, vector<128x128xf32> -> vector<128x128xf32>
    %c0_9 = arith.constant 0 : index
    %c0_10 = arith.constant 0 : index
    %11 = vector.load %arg5[%c0_9, %c0_10] : memref<1x128xf32, #tpu.memory_space<vmem>>, vector<1x128xf32>
    %12 = vector.broadcast %11 : vector<1x128xf32> to vector<128x128xf32>
    %13 = arith.addf %10, %12 : vector<128x128xf32>
    %cst_11 = arith.constant 0.000000e+00 : f32
    %14 = vector.broadcast %cst_11 : f32 to vector<128x128xf32>
    %15 = arith.maximumf %13, %14 : vector<128x128xf32>
    %16 = arith.truncf %15 : vector<128x128xf32> to vector<128x128xbf16>
    %c0_12 = arith.constant 0 : index
    %c0_13 = arith.constant 0 : index
    %17 = vector.load %arg6[%c0_12, %c0_13] : memref<128x128xbf16, #tpu.memory_space<vmem>>, vector<128x128xbf16>
    %cst_14 = arith.constant dense<0.000000e+00> : vector<128x128xf32>
    %18 = tpu.matmul %16, %17, %cst_14 {dimension_numbers = #tpu.dot_dimension_numbers<[1], [0], [0], [1], [0, 0, 1, 1], [], []>} : vector<128x128xbf16>, vector<128x128xbf16>, vector<128x128xf32> -> vector<128x128xf32>
    %c0_15 = arith.constant 0 : index
    %c0_16 = arith.constant 0 : index
    %19 = vector.load %arg7[%c0_15, %c0_16] : memref<1x128xf32, #tpu.memory_space<vmem>>, vector<1x128xf32>
    %20 = vector.broadcast %19 : vector<1x128xf32> to vector<128x128xf32>
    %21 = arith.addf %18, %20 : vector<128x128xf32>
    %cst_17 = arith.constant 0.000000e+00 : f32
    %22 = vector.broadcast %cst_17 : f32 to vector<128x128xf32>
    %23 = arith.maximumf %21, %22 : vector<128x128xf32>
    %24 = arith.truncf %23 : vector<128x128xf32> to vector<128x128xbf16>
    %c0_18 = arith.constant 0 : index
    %c0_19 = arith.constant 0 : index
    %25 = vector.load %arg8[%c0_18, %c0_19] : memref<128x128xbf16, #tpu.memory_space<vmem>>, vector<128x128xbf16>
    %cst_20 = arith.constant dense<0.000000e+00> : vector<128x128xf32>
    %26 = tpu.matmul %24, %25, %cst_20 {dimension_numbers = #tpu.dot_dimension_numbers<[1], [0], [0], [1], [0, 0, 1, 1], [], []>} : vector<128x128xbf16>, vector<128x128xbf16>, vector<128x128xf32> -> vector<128x128xf32>
    %c0_21 = arith.constant 0 : index
    %c0_22 = arith.constant 0 : index
    %27 = vector.load %arg9[%c0_21, %c0_22] : memref<1x128xf32, #tpu.memory_space<vmem>>, vector<1x128xf32>
    %28 = vector.broadcast %27 : vector<1x128xf32> to vector<128x128xf32>
    %29 = arith.addf %26, %28 : vector<128x128xf32>
    %cst_23 = arith.constant 0.000000e+00 : f32
    %30 = vector.broadcast %cst_23 : f32 to vector<128x128xf32>
    %31 = arith.maximumf %29, %30 : vector<128x128xf32>
    %32 = arith.truncf %31 : vector<128x128xf32> to vector<128x128xbf16>
    %c0_24 = arith.constant 0 : index
    %c0_25 = arith.constant 0 : index
    %33 = vector.load %arg10[%c0_24, %c0_25] : memref<128x128xbf16, #tpu.memory_space<vmem>>, vector<128x128xbf16>
    %cst_26 = arith.constant dense<0.000000e+00> : vector<128x128xf32>
    %34 = tpu.matmul %32, %33, %cst_26 {dimension_numbers = #tpu.dot_dimension_numbers<[1], [0], [0], [1], [0, 0, 1, 1], [], []>} : vector<128x128xbf16>, vector<128x128xbf16>, vector<128x128xf32> -> vector<128x128xf32>
    %c0_27 = arith.constant 0 : index
    %c0_28 = arith.constant 0 : index
    %35 = vector.load %arg11[%c0_27, %c0_28] : memref<1x128xf32, #tpu.memory_space<vmem>>, vector<1x128xf32>
    %36 = vector.broadcast %35 : vector<1x128xf32> to vector<128x128xf32>
    %37 = arith.addf %34, %36 : vector<128x128xf32>
    %c0_29 = arith.constant 0 : index
    %c0_30 = arith.constant 0 : index
    %38 = vector.load %arg12[%c0_29, %c0_30] : memref<128x128xf32, #tpu.memory_space<vmem>>, vector<128x128xf32>
    tpu.vector_store %arg12[%c0_29, %c0_30], %37 {strides = array<i32>} : memref<128x128xf32, #tpu.memory_space<vmem>>, vector<128x128xf32>,
    return
  }
  func.func @transform_0(%arg0: i32) -> (i32, i32) {
    %c0_i32 = arith.constant 0 : i32
    %c0_i32_0 = arith.constant 0 : i32
    return %arg0, %c0_i32 : i32, i32
  }
  func.func @transform_1(%arg0: i32) -> (i32, i32) {
    %c0_i32 = arith.constant 0 : i32
    %c0_i32_0 = arith.constant 0 : i32
    %c0_i32_1 = arith.constant 0 : i32
    return %c0_i32, %c0_i32_0 : i32, i32
  }
  func.func @transform_2(%arg0: i32) -> (i32, i32) {
    %c0_i32 = arith.constant 0 : i32
    %c0_i32_0 = arith.constant 0 : i32
    %c0_i32_1 = arith.constant 0 : i32
    return %c0_i32, %c0_i32_0 : i32, i32
  }
  func.func @transform_3(%arg0: i32) -> (i32, i32) {
    %c0_i32 = arith.constant 0 : i32
    %c0_i32_0 = arith.constant 0 : i32
    %c0_i32_1 = arith.constant 0 : i32
    return %c0_i32, %c0_i32_0 : i32, i32
  }
  func.func @transform_4(%arg0: i32) -> (i32, i32) {
    %c0_i32 = arith.constant 0 : i32
    %c0_i32_0 = arith.constant 0 : i32
    %c0_i32_1 = arith.constant 0 : i32
    return %c0_i32, %c0_i32_0 : i32, i32
  }
  func.func @transform_5(%arg0: i32) -> (i32, i32) {
    %c0_i32 = arith.constant 0 : i32
    %c0_i32_0 = arith.constant 0 : i32
    %c0_i32_1 = arith.constant 0 : i32
    return %c0_i32, %c0_i32_0 : i32, i32
  }
  func.func @transform_6(%arg0: i32) -> (i32, i32) {
    %c0_i32 = arith.constant 0 : i32
    %c0_i32_0 = arith.constant 0 : i32
    %c0_i32_1 = arith.constant 0 : i32
    return %c0_i32, %c0_i32_0 : i32, i32
  }
  func.func @transform_7(%arg0: i32) -> (i32, i32) {
    %c0_i32 = arith.constant 0 : i32
    %c0_i32_0 = arith.constant 0 : i32
    %c0_i32_1 = arith.constant 0 : i32
    return %c0_i32, %c0_i32_0 : i32, i32
  }
  func.func @transform_8(%arg0: i32) -> (i32, i32) {
    %c0_i32 = arith.constant 0 : i32
    %c0_i32_0 = arith.constant 0 : i32
    %c0_i32_1 = arith.constant 0 : i32
    return %c0_i32, %c0_i32_0 : i32, i32
  }
  func.func @transform_9(%arg0: i32) -> (i32, i32) {
    %c0_i32 = arith.constant 0 : i32
    %c0_i32_0 = arith.constant 0 : i32
    %c0_i32_1 = arith.constant 0 : i32
    return %c0_i32, %c0_i32_0 : i32, i32
  }
  func.func @transform_10(%arg0: i32) -> (i32, i32) {
    %c0_i32 = arith.constant 0 : i32
    %c0_i32_0 = arith.constant 0 : i32
    %c0_i32_1 = arith.constant 0 : i32
    return %c0_i32, %c0_i32_0 : i32, i32
  }
  func.func @transform_11(%arg0: i32) -> (i32, i32) {
    %c0_i32 = arith.constant 0 : i32
    %c0_i32_0 = arith.constant 0 : i32
    return %arg0, %c0_i32 : i32, i32
  }
}

</mosaic_0001>

<bundles_post_ra>
// kernel: tpu_custom_call.1
= control target key start
LH: loop header
LB: loop body
LE: loop exit
PB: predicated region body
PF: predicated region fallthrough
CT: control target
= control target key end

     0   :  { %16 = vsyncpa [#allocation3], 0  ;;  %s1958_s0 = inlined_call_operand.hbm [shape: bf16[128,256], index: 0, kind: input, shape index: {}]   ;;  %s1959_s1 = inlined_call_operand.hbm [shape: bf16[256,128], index: 1, kind: input, shape index: {}]   ;;  %s1960_s2 = inlined_call_operand.vmem [shape: f32[1,128], index: 2, kind: input, shape index: {}]   ;;  %s1961_s3 = inlined_call_operand.hbm [shape: bf16[128,128], index: 3, kind: input, shape index: {}]   ;;  %s1962_s4 = inlined_call_operand.vmem [shape: f32[1,128], index: 4, kind: input, shape index: {}]   ;;  %s1963_s5 = inlined_call_operand.hbm [shape: bf16[128,128], index: 5, kind: input, shape index: {}]   ;;  %s1964_s6 = inlined_call_operand.vmem [shape: f32[1,128], index: 6, kind: input, shape index: {}]   ;;  %s1965_s7 = inlined_call_operand.hbm [shape: bf16[128,128], index: 7, kind: input, shape index: {}]   ;;  %s1966_s8 = inlined_call_operand.vmem [shape: f32[1,128], index: 8, kind: input, shape index: {}]   ;;  %s1967_s9 = inlined_call_operand.hbm [shape: bf16[128,128], index: 9, kind: input, shape index: {}]   ;;  %s1968_s10 = inlined_call_operand.vmem [shape: f32[1,128], index: 10, kind: input, shape index: {}]   ;;  %s1969_s11 = inlined_call_operand.hbm [shape: f32[128,128], index: 11, kind: output, shape index: {}]  }
   0x1   :  { %17 = vsyncpa [#allocation6], 0 }
   0x2   :  { %18 = vsyncpa [#allocation9], 0 }
   0x3   :  { %19 = vsyncpa [#allocation12], 0 }
   0x4   :  { %20 = vsyncpa [#allocation4], 0  ;;  %s1812_s17 = smov [#allocation5]  }
   0x5   :  { %s38_s18 = sshll.u32 %s1812_s17, 4  ;;  %s39_s18 = int_to_ptr.vmem [resolvable:$true] %s38_s18 }
   0x6   :  { %s1670_s19 = scalar_lea.vmem %s39_s18, 2048  ;;  %p1675_p1 = scmp.lt.s32.totalorder %s39_s18, %s39_s18 }
   0x7   :  { %p1671_p0 = scmp.ne.s32.totalorder %s39_s18, %s1670_s19  ;;  %p1676_p2 = scmp.lt.s32.totalorder %s1670_s19, %s1670_s19 }
   0x9   :  { %p1677_p3 = por %p1676_p2, %p1675_p1 }
   0xb   :  { %p1678_p4 = pnand %p1677_p3, %p1671_p0 }
   0xd   :  { %1681 = shalt.err (!%p1678_p4)
}
   0xe   :  { %s1813_s20 = smov 64   ;;  %s1814_s21 = smov 4  }
   0xf   :  { %44 = dma.hbm_to_vmem [thread:$0]  %s1959_s1, 2048, %s39_s18, [#allocation6], %s1813_s20, %s1813_s20, %s1814_s21  }
  0x10   :  { %s1815_s24 = smov [#allocation8]   ;;  %s1816_s26 = smov [#allocation2]  }
  0x11   :  { %s66_s25 = sshll.u32 %s1815_s24, 4  ;;  %s26_s27 = sshll.u32 %s1816_s26, 4  ;;  %s67_s25 = int_to_ptr.vmem [resolvable:$true] %s66_s25  ;;  %s27_s27 = int_to_ptr.vmem [resolvable:$true] %s26_s27 }
  0x12   :  { %s1690_s28 = scalar_lea.vmem %s67_s25, 1024  ;;  %p1695_p6 = scmp.lt.s32.totalorder %s67_s25, %s67_s25 }
  0x13   :  { %p1691_p5 = scmp.ne.s32.totalorder %s67_s25, %s1690_s28  ;;  %p1696_p7 = scmp.lt.s32.totalorder %s1690_s28, %s1690_s28 }
  0x15   :  { %p1697_p8 = por %p1696_p7, %p1695_p6 }
  0x17   :  { %p1698_p9 = pnand %p1697_p8, %p1691_p5 }
  0x19   :  { %1701 = shalt.err (!%p1698_p9)
}
  0x1a   :  { %72 = dma.hbm_to_vmem [thread:$0]  %s1963_s5, 1024, %s67_s25, [#allocation9], %s1813_s20, %s1813_s20, %s1814_s21  }
  0x1b   :  { %s1710_s1 = scalar_lea.vmem %s27_s27, 2048  ;;  %p1715_p11 = scmp.lt.s32.totalorder %s27_s27, %s27_s27 }
  0x1c   :  { %p1711_p10 = scmp.ne.s32.totalorder %s27_s27, %s1710_s1  ;;  %p1716_p12 = scmp.lt.s32.totalorder %s1710_s1, %s1710_s1 }
  0x1e   :  { %p1717_p13 = por %p1716_p12, %p1715_p11 }
  0x20   :  { %p1718_p0 = pnand %p1717_p13, %p1711_p10 }
  0x22   :  { %1721 = shalt.err (!%p1718_p0)
}
  0x23   :  { %s1817_s12 = smov 128   ;;  %s1818_s13 = smov 8  }
  0x24   :  { %32 = dma.hbm_to_vmem [thread:$0]  %s1958_s0, 2048, %s27_s27, [#allocation3], %s1817_s12, %s1817_s12, %s1818_s13  }
  0x25   :  { %s1819_s16 = smov [#allocation7]   ;;  %s1820_s5 = smov [#allocation10]  }
  0x26   :  { %s52_s17 = sshll.u32 %s1819_s16, 4  ;;  %s80_s18 = sshll.u32 %s1820_s5, 4  ;;  %s53_s17 = int_to_ptr.vmem [resolvable:$true] %s52_s17  ;;  %s81_s18 = int_to_ptr.vmem [resolvable:$true] %s80_s18 }
  0x27   :  { %s1730_s19 = scalar_lea.vmem %s53_s17, 1024  ;;  %p1735_p2 = scmp.lt.s32.totalorder %s53_s17, %s53_s17 }
  0x28   :  { %p1731_p1 = scmp.ne.s32.totalorder %s53_s17, %s1730_s19  ;;  %p1736_p3 = scmp.lt.s32.totalorder %s1730_s19, %s1730_s19 }
  0x2a   :  { %p1737_p4 = por %p1736_p3, %p1735_p2 }
  0x2c   :  { %p1738_p5 = pnand %p1737_p4, %p1731_p1 }
  0x2e   :  { %1741 = shalt.err (!%p1738_p5)
}
  0x2f   :  { %58 = dma.hbm_to_vmem [thread:$0]  %s1961_s3, 1024, %s53_s17, [#allocation6], %s1813_s20, %s1813_s20, %s1814_s21  }
  0x30   :  { %s1750_s0 = scalar_lea.vmem %s81_s18, 1024  ;;  %p1755_p7 = scmp.lt.s32.totalorder %s81_s18, %s81_s18 }
  0x31   :  { %p1751_p6 = scmp.ne.s32.totalorder %s81_s18, %s1750_s0  ;;  %p1756_p8 = scmp.lt.s32.totalorder %s1750_s0, %s1750_s0 }
  0x33   :  { %p1757_p9 = por %p1756_p8, %p1755_p7 }
  0x35   :  { %p1758_p10 = pnand %p1757_p9, %p1751_p6 }
  0x37   :  { %1761 = shalt.err (!%p1758_p10)
}
  0x38   :  { %86 = dma.hbm_to_vmem [thread:$0]  %s1965_s7, 1024, %s81_s18, [#allocation9], %s1813_s20, %s1813_s20, %s1814_s21  }
  0x39   :  { %s1821_s26 = smov [#allocation11]  }
  0x3a   :  { %s94_s27 = sshll.u32 %s1821_s26, 4  ;;  %s95_s27 = int_to_ptr.vmem [resolvable:$true] %s94_s27 }
  0x3b   :  { %s1770_s28 = scalar_lea.vmem %s95_s27, 1024  ;;  %p1775_p12 = scmp.lt.s32.totalorder %s95_s27, %s95_s27 }
  0x3c   :  { %p1771_p11 = scmp.ne.s32.totalorder %s95_s27, %s1770_s28  ;;  %p1776_p13 = scmp.lt.s32.totalorder %s1770_s28, %s1770_s28 }
  0x3e   :  { %p1777_p0 = por %p1776_p13, %p1775_p12 }
  0x40   :  { %p1778_p1 = pnand %p1777_p0, %p1771_p11 }
  0x42   :  { %1781 = shalt.err (!%p1778_p1)
}
  0x43   :  { %100 = dma.hbm_to_vmem [thread:$0]  %s1967_s9, 1024, %s95_s27, [#allocation12], %s1813_s20, %s1813_s20, %s1814_s21  }
  0x44   :  { %1802 = dma.done.wait [#allocation3], 2048  }
  0x45   :  { %1803 = vsyncadd [#allocation3], 4294965248 }
  0x46   :  { %1804 = dma.done.wait [#allocation6], 3072  }
  0x47   :  { %1805 = vsyncadd [#allocation6], 4294964224 }
  0x48   :  { %1806 = dma.done.wait [#allocation9], 2048  }
  0x49   :  { %1807 = vsyncadd [#allocation9], 4294965248 }
  0x4a   :  { %1808 = dma.done.wait [#allocation12], 1024  }
  0x4b   :  { %1809 = vsyncadd [#allocation12], 4294966272  ;;  %v1590_v0 = vld [vmem:[#allocation5 + $0x78] sm:$0xff]   ;;  %v1592_v2 = vld [vmem:[#allocation5 + $0x70] sm:$0xff]  }
  0x4c   :  { %v1591_v1 = vld [vmem:[#allocation5 + $0x38] sm:$0xff]   ;;  %1323 = vmatprep.subr.bf16.mxu0 %v1590_v0  ;;  %v1593_v3 = vld [vmem:[#allocation5 + $0x30] sm:$0xff]   ;;  %v1594_v4 = vld [vmem:[#allocation5 + $0x68] sm:$0xff]  }
  0x4d   :  { %1324 = vmatpush3.bf16.msra.mxu0 %v1591_v1  ;;  %v1595_v5 = vld [vmem:[#allocation5 + $0x28] sm:$0xff]   ;;  %v1596_v6 = vld [vmem:[#allocation5 + $0x60] sm:$0xff]   ;;  %v1598_v8 = vld [vmem:[#allocation5 + $0x58] sm:$0xff]  }
  0x4e   :  { %1325 = vmatprep.subr.bf16.mxu0 %v1592_v2  ;;  %v1597_v7 = vld [vmem:[#allocation5 + $0x20] sm:$0xff]   ;;  %v1599_v9 = vld [vmem:[#allocation5 + $0x18] sm:$0xff]   ;;  %v1600_v10 = vld [vmem:[#allocation5 + $0x50] sm:$0xff]  }
  0x4f   :  { %v1608_v11 = vld [vmem:[#allocation2 + $0x4] ss:$8 sps:$4 sm:$0xff]   ;;  %v1601_v12 = vld [vmem:[#allocation5 + $0x10] sm:$0xff]   ;;  %v1630_v17 = vld [vmem:[#allocation7 + $0x38] sm:$0xff]  }
  0x50   :  { %385 = vmatprep.mubr.bf16.mxu0 %v1608_v11  ;;  %v1602_v13 = vld [vmem:[#allocation5 + $0x48] sm:$0xff]   ;;  %v1604_v15 = vld [vmem:[#allocation5 + $0x40] sm:$0xff]   ;;  %v1631_v19 = vld [vmem:[#allocation7 + $0x30] sm:$0xff]   ;;  %1451 = vmatprep.subr.bf16.mxu1 %v1630_v17 }
  0x51   :  { %1326 = vmatpush3.bf16.msra.mxu0 %v1593_v3  ;;  %v1603_v14 = vld [vmem:[#allocation5 + $0x8] sm:$0xff]   ;;  %v1605_v16 = vld [vmem:[#allocation5] sm:$0xff]   ;;  %v1609_v20 = vld [vmem:[#allocation2 + $0x14] ss:$8 sps:$4 sm:$0xff]   ;;  %1452 = vmatpush3.bf16.msra.mxu1 %v1630_v17 }
  0x52   :  { %1327 = vmatprep.subr.bf16.mxu0 %v1594_v4  ;;  %v1606_v18 = vld [vmem:[#allocation2] ss:$8 sps:$4 sm:$0xff]   ;;  %1453 = vmatprep.subr.bf16.mxu1 %v1631_v19  ;;  %v1611_v22 = vld [vmem:[#allocation2 + $0x10] ss:$8 sps:$4 sm:$0xff]   ;;  %v1612_v23 = vld [vmem:[#allocation2 + $0x24] ss:$8 sps:$4 sm:$0xff]  }
  0x53   :  { %v1632_v21 = vld [vmem:[#allocation7 + $0x28] sm:$0xff]   ;;  %v1615_v25 = vld [vmem:[#allocation2 + $0x34] ss:$8 sps:$4 sm:$0xff]   ;;  %v1617_v26 = vld [vmem:[#allocation2 + $0x30] ss:$8 sps:$4 sm:$0xff]  }
  0x54   :  { %v1614_v24 = vld [vmem:[#allocation2 + $0x20] ss:$8 sps:$4 sm:$0xff]   ;;  %v1618_v27 = vld [vmem:[#allocation2 + $0x44] ss:$8 sps:$4 sm:$0xff]   ;;  %v1621_v29 = vld [vmem:[#allocation2 + $0x54] ss:$8 sps:$4 sm:$0xff]  }
  0x55   :  { %1328 = vmatpush3.bf16.msra.mxu0 %v1595_v5  ;;  %1454 = vmatpush3.bf16.msra.mxu1 %v1631_v19  ;;  %v1620_v28 = vld [vmem:[#allocation2 + $0x40] ss:$8 sps:$4 sm:$0xff]   ;;  %v1623_v30 = vld [vmem:[#allocation2 + $0x50] ss:$8 sps:$4 sm:$0xff]   ;;  %v1624_v31 = vld [vmem:[#allocation2 + $0x64] ss:$8 sps:$4 sm:$0xff]  }
  0x56   :  { %1329 = vmatprep.subr.bf16.mxu0 %v1596_v6  ;;  %1455 = vmatprep.subr.bf16.mxu1 %v1632_v21  ;;  %v1626_v32 = vld [vmem:[#allocation2 + $0x60] ss:$8 sps:$4 sm:$0xff]   ;;  %v1627_v33 = vld [vmem:[#allocation2 + $0x74] ss:$8 sps:$4 sm:$0xff]   ;;  %v1629_v34 = vld [vmem:[#allocation2 + $0x70] ss:$8 sps:$4 sm:$0xff]  }
  0x57   :  { %v1633_v35 = vld [vmem:[#allocation7 + $0x20] sm:$0xff]   ;;  %v1634_v36 = vld [vmem:[#allocation7 + $0x18] sm:$0xff]   ;;  %v1635_v37 = vld [vmem:[#allocation7 + $0x10] sm:$0xff]  }
  0x58   :  { %v1636_v38 = vld [vmem:[#allocation7 + $0x8] sm:$0xff]   ;;  %v1637_v39 = vld [vmem:[#allocation7] sm:$0xff]   ;;  %v1638_v40 = vld [vmem:[#allocation8 + $0x38] sm:$0xff]  }
  0x59   :  { %1330 = vmatpush3.bf16.msra.mxu0 %v1597_v7  ;;  %1456 = vmatpush3.bf16.msra.mxu1 %v1632_v21  ;;  %v1922_v45 = vld [vmem:[%s1960_s2] ss:$0 sm:$0xff]  ;;  %v1639_v4 = vld [vmem:[#allocation8 + $0x30] sm:$0xff]  }
  0x5a   :  { %1331 = vmatprep.subr.bf16.mxu0 %v1598_v8  ;;  %1457 = vmatprep.subr.bf16.mxu1 %v1633_v35  ;;  %v1641_v17 = vld [vmem:[#allocation8 + $0x20] sm:$0xff]  }
  0x5d   :  { %1332 = vmatpush3.bf16.msra.mxu0 %v1599_v9  ;;  %1458 = vmatpush3.bf16.msra.mxu1 %v1633_v35 }
  0x5e   :  { %1333 = vmatprep.subr.bf16.mxu0 %v1600_v10  ;;  %1459 = vmatprep.subr.bf16.mxu1 %v1634_v36  ;;  %v1640_v10 = vld [vmem:[#allocation8 + $0x28] sm:$0xff]  }
  0x61   :  { %1334 = vmatpush3.bf16.msra.mxu0 %v1601_v12  ;;  %1460 = vmatpush3.bf16.msra.mxu1 %v1634_v36 }
  0x62   :  { %1335 = vmatprep.subr.bf16.mxu0 %v1602_v13  ;;  %1461 = vmatprep.subr.bf16.mxu1 %v1635_v37 }
  0x65   :  { %1336 = vmatpush3.bf16.msra.mxu0 %v1603_v14  ;;  %1462 = vmatpush3.bf16.msra.mxu1 %v1635_v37 }
  0x66   :  { %1337 = vmatprep.subr.bf16.mxu0 %v1604_v15  ;;  %1463 = vmatprep.subr.bf16.mxu1 %v1636_v38 }
  0x69   :  { %1338 = vmatpush3.bf16.msra.mxu0 %v1605_v16  ;;  %1464 = vmatpush3.bf16.msra.mxu1 %v1636_v38 }
  0x6a   :  { %1465 = vmatprep.subr.bf16.mxu1 %v1637_v39 }
  0x6c   :  { %386 = vmatmul.mubr.bf16.vlgmr.msra.gmra.mxu0 %v1606_v18 }
  0x6d   :  { %393 = vmatprep.mubr.bf16.mxu0 %v1609_v20  ;;  %1466 = vmatpush3.bf16.msra.mxu1 %v1637_v39 }
  0x6e   :  { %1483 = vmatprep.subr.bf16.mxu1 %v1638_v40 }
  0x74   :  { %394 = vmatmul.mubr.bf16.gmra.mxu0 %v1611_v22 }
  0x75   :  { %401 = vmatprep.mubr.bf16.mxu0 %v1612_v23  ;;  %v1642_v23 = vld [vmem:[#allocation8 + $0x18] sm:$0xff]  }
  0x7c   :  { %402 = vmatmul.mubr.bf16.gmra.mxu0 %v1614_v24 }
  0x7d   :  { %409 = vmatprep.mubr.bf16.mxu0 %v1615_v25 }
  0x84   :  { %410 = vmatmul.mubr.bf16.gmra.mxu0 %v1617_v26 }
  0x85   :  { %417 = vmatprep.mubr.bf16.mxu0 %v1618_v27 }
  0x8c   :  { %418 = vmatmul.mubr.bf16.gmra.mxu0 %v1620_v28 }
  0x8d   :  { %425 = vmatprep.mubr.bf16.mxu0 %v1621_v29 }
  0x94   :  { %426 = vmatmul.mubr.bf16.gmra.mxu0 %v1623_v30 }
  0x95   :  { %433 = vmatprep.mubr.bf16.mxu0 %v1624_v31 }
  0x9c   :  { %434 = vmatmul.mubr.bf16.gmra.mxu0 %v1626_v32 }
  0x9d   :  { %441 = vmatprep.mubr.bf16.mxu0 %v1627_v33 }
  0xa4   :  { %442 = vmatmul.mubr.bf16.gmra.mxu0 %v1629_v34 }
 0x12c   :  { %v1339_v41 = vpop.f32.mrf.mxu0 }
 0x12e   :  { %v1340_v42 = vpop.f32.mrf.mxu0 }
 0x12f   :  { %v1341_v43 = vadd.f32 %v1340_v42, %v1339_v41 }
 0x130   :  { %v1342_v44 = vpop.f32.mrf.mxu0 }
 0x131   :  { %v388_v48 = vadd.f32 %v1341_v43, %v1922_v45 }
 0x132   :  { %v1343_v46 = vpop.f32.mrf.mxu0 }
 0x133   :  { %v1344_v47 = vadd.f32 %v1343_v46, %v1342_v44  ;;  %v450_v53 = vmax.f32 %v388_v48, 0.0 }
 0x134   :  { %v1345_v49 = vpop.f32.mrf.mxu0 }
 0x135   :  { %v391_v50 = vadd.f32 %v1344_v47, %v1922_v45 }
 0x136   :  { %v1346_v51 = vpop.f32.mrf.mxu0 }
 0x137   :  { %v1347_v52 = vadd.f32 %v1346_v51, %v1345_v49  ;;  %v451_v54 = vmax.f32 %v391_v50, 0.0 }
 0x138   :  { %v1348_v55 = vpop.f32.mrf.mxu0 }
 0x139   :  { %v466_v56 = vpack.c.bf16 %v451_v54, %v450_v53  ;;  %v396_v58 = vadd.f32 %v1347_v52, %v1922_v45 }
 0x13a   :  { %v1349_v57 = vpop.f32.mrf.mxu0 }
 0x13b   :  { %v1350_v59 = vadd.f32 %v1349_v57, %v1348_v55  ;;  %1467 = vmatprep.mubr.bf16.mxu1 %v466_v56  ;;  %v452_v63 = vmax.f32 %v396_v58, 0.0 }
 0x13c   :  { %v1351_v60 = vpop.f32.mrf.mxu0 }
 0x13d   :  { %v399_v61 = vadd.f32 %v1350_v59, %v1922_v45 }
 0x13e   :  { %v1352_v62 = vpop.f32.mrf.mxu0 }
 0x13f   :  { %v453_v0 = vmax.f32 %v399_v61, 0.0  ;;  %v1353_v1 = vadd.f32 %v1352_v62, %v1351_v60 }
 0x140   :  { %v1354_v2 = vpop.f32.mrf.mxu0 }
 0x141   :  { %v467_v3 = vpack.c.bf16 %v453_v0, %v452_v63  ;;  %v404_v6 = vadd.f32 %v1353_v1, %v1922_v45 }
 0x142   :  { %v1355_v5 = vpop.f32.mrf.mxu0 }
 0x143   :  { %v1356_v7 = vadd.f32 %v1355_v5, %v1354_v2  ;;  %1468 = vmatmul.mubr.bf16.vlgmr.msra.gmra.mxu1 %v467_v3  ;;  %v454_v12 = vmax.f32 %v404_v6, 0.0 }
 0x144   :  { %v1357_v8 = vpop.f32.mrf.mxu0  ;;  %1484 = vmatpush3.bf16.msra.mxu1 %v1638_v40 }
 0x145   :  { %v407_v9 = vadd.f32 %v1356_v7, %v1922_v45  ;;  %1485 = vmatprep.subr.bf16.mxu1 %v1639_v4  ;;  %v1643_v7 = vld [vmem:[#allocation8 + $0x10] sm:$0xff]  }
 0x146   :  { %v1358_v11 = vpop.f32.mrf.mxu0 }
 0x147   :  { %v455_v13 = vmax.f32 %v407_v9, 0.0  ;;  %v1359_v14 = vadd.f32 %v1358_v11, %v1357_v8  ;;  %v1644_v8 = vld [vmem:[#allocation8 + $0x8] sm:$0xff]   ;;  %v1645_v9 = vld [vmem:[#allocation8] sm:$0xff]   ;;  %v1647_v11 = vld [vmem:[#allocation10 + $0x30] sm:$0xff]  }
 0x148   :  { %v1360_v15 = vpop.f32.mrf.mxu0  ;;  %1486 = vmatpush3.bf16.msra.mxu1 %v1639_v4 }
 0x149   :  { %v468_v16 = vpack.c.bf16 %v455_v13, %v454_v12  ;;  %1487 = vmatprep.subr.bf16.mxu1 %v1640_v10  ;;  %v412_v19 = vadd.f32 %v1359_v14, %v1922_v45  ;;  %v1648_v12 = vld [vmem:[#allocation10 + $0x28] sm:$0xff]   ;;  %v1650_v13 = vld [vmem:[#allocation10 + $0x18] sm:$0xff]  }
 0x14a   :  { %v1361_v18 = vpop.f32.mrf.mxu0 }
 0x14b   :  { %v1362_v20 = vadd.f32 %v1361_v18, %v1360_v15  ;;  %1471 = vmatprep.mubr.bf16.mxu1 %v468_v16  ;;  %v456_v25 = vmax.f32 %v412_v19, 0.0  ;;  %v1287_v16 = vld [vmem:[%s1962_s4] ss:$0 sm:$0xff] }
 0x14c   :  { %v1363_v21 = vpop.f32.mrf.mxu0  ;;  %1488 = vmatpush3.bf16.msra.mxu1 %v1640_v10  ;;  %v1646_v10 = vld [vmem:[#allocation10 + $0x38] sm:$0xff]  }
 0x14d   :  { %v415_v22 = vadd.f32 %v1362_v20, %v1922_v45  ;;  %1489 = vmatprep.subr.bf16.mxu1 %v1641_v17  ;;  %1515 = vmatprep.subr.bf16.mxu0 %v1646_v10 }
 0x14e   :  { %v1364_v24 = vpop.f32.mrf.mxu0  ;;  %1516 = vmatpush3.bf16.msra.mxu0 %v1646_v10  ;;  %v1653_v10 = vld [vmem:[#allocation10] sm:$0xff]  }
 0x14f   :  { %v457_v26 = vmax.f32 %v415_v22, 0.0  ;;  %v1365_v27 = vadd.f32 %v1364_v24, %v1363_v21  ;;  %1517 = vmatprep.subr.bf16.mxu0 %v1647_v11 }
 0x150   :  { %v1366_v28 = vpop.f32.mrf.mxu0  ;;  %1490 = vmatpush3.bf16.msra.mxu1 %v1641_v17 }
 0x151   :  { %v469_v29 = vpack.c.bf16 %v457_v26, %v456_v25  ;;  %1491 = vmatprep.subr.bf16.mxu1 %v1642_v23  ;;  %v420_v31 = vadd.f32 %v1365_v27, %v1922_v45 }
 0x152   :  { %v1367_v30 = vpop.f32.mrf.mxu0  ;;  %1518 = vmatpush3.bf16.msra.mxu0 %v1647_v11  ;;  %v1654_v11 = vld [vmem:[#allocation11 + $0x38] sm:$0xff]  }
 0x153   :  { %v1368_v32 = vadd.f32 %v1367_v30, %v1366_v28  ;;  %1472 = vmatmul.mubr.bf16.gmra.mxu1 %v469_v29  ;;  %v458_v36 = vmax.f32 %v420_v31, 0.0  ;;  %1519 = vmatprep.subr.bf16.mxu0 %v1648_v12 }
 0x154   :  { %v1369_v33 = vpop.f32.mrf.mxu0  ;;  %1492 = vmatpush3.bf16.msra.mxu1 %v1642_v23 }
 0x155   :  { %v423_v34 = vadd.f32 %v1368_v32, %v1922_v45  ;;  %1493 = vmatprep.subr.bf16.mxu1 %v1643_v7 }
 0x156   :  { %v1370_v35 = vpop.f32.mrf.mxu0  ;;  %1520 = vmatpush3.bf16.msra.mxu0 %v1648_v12  ;;  %v1655_v12 = vld [vmem:[#allocation11 + $0x30] sm:$0xff]  }
 0x157   :  { %v459_v37 = vmax.f32 %v423_v34, 0.0  ;;  %v1371_v38 = vadd.f32 %v1370_v35, %v1369_v33 }
 0x158   :  { %v1372_v39 = vpop.f32.mrf.mxu0  ;;  %1494 = vmatpush3.bf16.msra.mxu1 %v1643_v7 }
 0x159   :  { %v470_v40 = vpack.c.bf16 %v459_v37, %v458_v36  ;;  %v428_v42 = vadd.f32 %v1371_v38, %v1922_v45  ;;  %1495 = vmatprep.subr.bf16.mxu1 %v1644_v8 }
 0x15a   :  { %v1373_v41 = vpop.f32.mrf.mxu0 }
 0x15b   :  { %v1374_v43 = vadd.f32 %v1373_v41, %v1372_v39  ;;  %1475 = vmatprep.mubr.bf16.mxu1 %v470_v40  ;;  %v460_v48 = vmax.f32 %v428_v42, 0.0 }
 0x15c   :  { %v1375_v44 = vpop.f32.mrf.mxu0  ;;  %1496 = vmatpush3.bf16.msra.mxu1 %v1644_v8  ;;  %v1651_v8 = vld [vmem:[#allocation10 + $0x10] sm:$0xff]  }
 0x15d   :  { %v431_v46 = vadd.f32 %v1374_v43, %v1922_v45  ;;  %1497 = vmatprep.subr.bf16.mxu1 %v1645_v9 }
 0x15e   :  { %v1376_v47 = vpop.f32.mrf.mxu0 }
 0x15f   :  { %v461_v49 = vmax.f32 %v431_v46, 0.0  ;;  %v1377_v50 = vadd.f32 %v1376_v47, %v1375_v44 }
 0x160   :  { %v1378_v51 = vpop.f32.mrf.mxu0  ;;  %1498 = vmatpush3.bf16.msra.mxu1 %v1645_v9  ;;  %v1652_v9 = vld [vmem:[#allocation10 + $0x8] sm:$0xff]  }
 0x161   :  { %v471_v52 = vpack.c.bf16 %v461_v49, %v460_v48  ;;  %v436_v54 = vadd.f32 %v1377_v50, %v1922_v45  ;;  %1547 = vmatprep.subr.bf16.mxu1 %v1654_v11 }
 0x162   :  { %v1379_v53 = vpop.f32.mrf.mxu0 }
 0x163   :  { %v1380_v55 = vadd.f32 %v1379_v53, %v1378_v51  ;;  %1476 = vmatmul.mubr.bf16.gmra.mxu1 %v471_v52  ;;  %v462_v59 = vmax.f32 %v436_v54, 0.0 }
 0x164   :  { %v1381_v56 = vpop.f32.mrf.mxu0 }
 0x165   :  { %v439_v57 = vadd.f32 %v1380_v55, %v1922_v45 }
 0x166   :  { %v1382_v58 = vpop.f32.mrf.mxu0 }
 0x167   :  { %v463_v60 = vmax.f32 %v439_v57, 0.0  ;;  %v1383_v61 = vadd.f32 %v1382_v58, %v1381_v56 }
 0x168   :  { %v1384_v62 = vpop.f32.mrf.mxu0 }
 0x169   :  { %v472_v63 = vpack.c.bf16 %v463_v60, %v462_v59  ;;  %v444_v1 = vadd.f32 %v1383_v61, %v1922_v45 }
 0x16a   :  { %v1385_v0 = vpop.f32.mrf.mxu0 }
 0x16b   :  { %v1386_v2 = vadd.f32 %v1385_v0, %v1384_v62  ;;  %1479 = vmatprep.mubr.bf16.mxu1 %v472_v63  ;;  %v464_v4 = vmax.f32 %v444_v1, 0.0 }
 0x16d   :  { %v447_v3 = vadd.f32 %v1386_v2, %v1922_v45  ;;  %v1649_v45 = vld [vmem:[#allocation10 + $0x20] sm:$0xff]  }
 0x16e   :  { %1521 = vmatprep.subr.bf16.mxu0 %v1649_v45 }
 0x16f   :  { %v465_v5 = vmax.f32 %v447_v3, 0.0  ;;  %1522 = vmatpush3.bf16.msra.mxu0 %v1649_v45  ;;  %v1656_v45 = vld [vmem:[#allocation11 + $0x28] sm:$0xff]  }
 0x170   :  { %1523 = vmatprep.subr.bf16.mxu0 %v1650_v13 }
 0x171   :  { %v473_v6 = vpack.c.bf16 %v465_v5, %v464_v4 }
 0x173   :  { %1480 = vmatmul.mubr.bf16.gmra.mxu1 %v473_v6  ;;  %1524 = vmatpush3.bf16.msra.mxu0 %v1650_v13  ;;  %v1657_v13 = vld [vmem:[#allocation11 + $0x20] sm:$0xff]  }
 0x174   :  { %1525 = vmatprep.subr.bf16.mxu0 %v1651_v8 }
 0x177   :  { %1526 = vmatpush3.bf16.msra.mxu0 %v1651_v8 }
 0x178   :  { %1527 = vmatprep.subr.bf16.mxu0 %v1652_v9 }
 0x17b   :  { %1528 = vmatpush3.bf16.msra.mxu0 %v1652_v9  ;;  %v1659_v9 = vld [vmem:[#allocation11 + $0x10] sm:$0xff]  }
 0x17c   :  { %1529 = vmatprep.subr.bf16.mxu0 %v1653_v10 }
 0x17f   :  { %1530 = vmatpush3.bf16.msra.mxu0 %v1653_v10  ;;  %v1660_v10 = vld [vmem:[#allocation11 + $0x8] sm:$0xff]  }
 0x203   :  { %v1469_v14 = vpop.f32.mrf.mxu1 }
 0x204   :  { %v588_v20 = vadd.f32 %v1469_v14, %v1287_v16  ;;  %v1658_v14 = vld [vmem:[#allocation11 + $0x18] sm:$0xff]  }
 0x205   :  { %v579_v15 = vpop.f32.mrf.mxu1 }
 0x206   :  { %v580_v18 = vadd.f32 %v1287_v16, %v579_v15  ;;  %v644_v26 = vmax.f32 %v588_v20, 0.0 }
 0x207   :  { %v1470_v17 = vpop.f32.mrf.mxu1 }
 0x208   :  { %v591_v19 = vadd.f32 %v1470_v17, %v1287_v16  ;;  %v642_v24 = vmax.f32 %v580_v18, 0.0  ;;  %v1296_v17 = vld [vmem:[%s1964_s6] ss:$0 sm:$0xff] }
 0x209   :  { %v582_v21 = vpop.f32.mrf.mxu1 }
 0x20a   :  { %v583_v22 = vadd.f32 %v1287_v16, %v582_v21  ;;  %v645_v23 = vmax.f32 %v591_v19, 0.0 }
 0x20c   :  { %v643_v25 = vmax.f32 %v583_v22, 0.0  ;;  %v659_v28 = vpack.c.bf16 %v645_v23, %v644_v26 }
 0x20e   :  { %v658_v27 = vpack.c.bf16 %v643_v25, %v642_v24 }
 0x210   :  { %1499 = vmatprep.mubr.bf16.mxu1 %v658_v27 }
 0x211   :  { %1500 = vmatmul.mubr.bf16.vlgmr.msra.gmra.mxu1 %v659_v28 }
 0x212   :  { %1548 = vmatpush3.bf16.msra.mxu1 %v1654_v11  ;;  %v1661_v11 = vld [vmem:[#allocation11] sm:$0xff]  }
 0x213   :  { %v1473_v29 = vpop.f32.mrf.mxu1  ;;  %1549 = vmatprep.subr.bf16.mxu1 %v1655_v12 }
 0x214   :  { %v604_v34 = vadd.f32 %v1473_v29, %v1287_v16 }
 0x215   :  { %v595_v30 = vpop.f32.mrf.mxu1 }
 0x216   :  { %v596_v32 = vadd.f32 %v1287_v16, %v595_v30  ;;  %v648_v40 = vmax.f32 %v604_v34, 0.0  ;;  %1550 = vmatpush3.bf16.msra.mxu1 %v1655_v12 }
 0x217   :  { %v1474_v31 = vpop.f32.mrf.mxu1  ;;  %1551 = vmatprep.subr.bf16.mxu1 %v1656_v45 }
 0x218   :  { %v607_v33 = vadd.f32 %v1474_v31, %v1287_v16  ;;  %v646_v38 = vmax.f32 %v596_v32, 0.0 }
 0x219   :  { %v598_v35 = vpop.f32.mrf.mxu1 }
 0x21a   :  { %v599_v36 = vadd.f32 %v1287_v16, %v598_v35  ;;  %v649_v37 = vmax.f32 %v607_v33, 0.0  ;;  %1552 = vmatpush3.bf16.msra.mxu1 %v1656_v45 }
 0x21b   :  { %1553 = vmatprep.subr.bf16.mxu1 %v1657_v13 }
 0x21c   :  { %v647_v39 = vmax.f32 %v599_v36, 0.0  ;;  %v661_v42 = vpack.c.bf16 %v649_v37, %v648_v40 }
 0x21e   :  { %v660_v41 = vpack.c.bf16 %v647_v39, %v646_v38  ;;  %1554 = vmatpush3.bf16.msra.mxu1 %v1657_v13  ;;  %v1305_v13 = vld [vmem:[%s1966_s8] ss:$0 sm:$0xff] }
 0x21f   :  { %1555 = vmatprep.subr.bf16.mxu1 %v1658_v14 }
 0x220   :  { %1503 = vmatprep.mubr.bf16.mxu1 %v660_v41 }
 0x221   :  { %1504 = vmatmul.mubr.bf16.gmra.mxu1 %v661_v42 }
 0x222   :  { %1556 = vmatpush3.bf16.msra.mxu1 %v1658_v14 }
 0x223   :  { %v1477_v43 = vpop.f32.mrf.mxu1  ;;  %1557 = vmatprep.subr.bf16.mxu1 %v1659_v9 }
 0x224   :  { %v620_v49 = vadd.f32 %v1477_v43, %v1287_v16 }
 0x225   :  { %v611_v44 = vpop.f32.mrf.mxu1 }
 0x226   :  { %v612_v47 = vadd.f32 %v1287_v16, %v611_v44  ;;  %v652_v55 = vmax.f32 %v620_v49, 0.0  ;;  %1558 = vmatpush3.bf16.msra.mxu1 %v1659_v9 }
 0x227   :  { %v1478_v46 = vpop.f32.mrf.mxu1  ;;  %1559 = vmatprep.subr.bf16.mxu1 %v1660_v10 }
 0x228   :  { %v623_v48 = vadd.f32 %v1478_v46, %v1287_v16  ;;  %v650_v53 = vmax.f32 %v612_v47, 0.0 }
 0x229   :  { %v614_v50 = vpop.f32.mrf.mxu1 }
 0x22a   :  { %v615_v51 = vadd.f32 %v1287_v16, %v614_v50  ;;  %v653_v52 = vmax.f32 %v623_v48, 0.0  ;;  %1560 = vmatpush3.bf16.msra.mxu1 %v1660_v10 }
 0x22b   :  { %1561 = vmatprep.subr.bf16.mxu1 %v1661_v11 }
 0x22c   :  { %v651_v54 = vmax.f32 %v615_v51, 0.0  ;;  %v663_v57 = vpack.c.bf16 %v653_v52, %v652_v55 }
 0x22e   :  { %v662_v56 = vpack.c.bf16 %v651_v54, %v650_v53  ;;  %1562 = vmatpush3.bf16.msra.mxu1 %v1661_v11 }
 0x230   :  { %1507 = vmatprep.mubr.bf16.mxu1 %v662_v56 }
 0x231   :  { %1508 = vmatmul.mubr.bf16.gmra.mxu1 %v663_v57 }
 0x233   :  { %v1481_v58 = vpop.f32.mrf.mxu1 }
 0x234   :  { %v636_v63 = vadd.f32 %v1481_v58, %v1287_v16 }
 0x235   :  { %v627_v59 = vpop.f32.mrf.mxu1 }
 0x236   :  { %v628_v61 = vadd.f32 %v1287_v16, %v627_v59  ;;  %v656_v5 = vmax.f32 %v636_v63, 0.0 }
 0x237   :  { %v1482_v60 = vpop.f32.mrf.mxu1 }
 0x238   :  { %v639_v62 = vadd.f32 %v1482_v60, %v1287_v16  ;;  %v654_v3 = vmax.f32 %v628_v61, 0.0 }
 0x239   :  { %v630_v0 = vpop.f32.mrf.mxu1 }
 0x23a   :  { %v631_v1 = vadd.f32 %v1287_v16, %v630_v0  ;;  %v657_v2 = vmax.f32 %v639_v62, 0.0 }
 0x23c   :  { %v655_v4 = vmax.f32 %v631_v1, 0.0  ;;  %v665_v7 = vpack.c.bf16 %v657_v2, %v656_v5 }
 0x23e   :  { %v664_v6 = vpack.c.bf16 %v655_v4, %v654_v3 }
 0x240   :  { %1511 = vmatprep.mubr.bf16.mxu1 %v664_v6 }
 0x241   :  { %1512 = vmatmul.mubr.bf16.gmra.mxu1 %v665_v7 }
 0x2d1   :  { %v1501_v15 = vpop.f32.mrf.mxu1 }
 0x2d2   :  { %v780_v21 = vadd.f32 %v1501_v15, %v1296_v17 }
 0x2d3   :  { %v771_v16 = vpop.f32.mrf.mxu1 }
 0x2d4   :  { %v772_v19 = vadd.f32 %v1296_v17, %v771_v16  ;;  %v836_v27 = vmax.f32 %v780_v21, 0.0 }
 0x2d5   :  { %v1502_v18 = vpop.f32.mrf.mxu1 }
 0x2d6   :  { %v783_v20 = vadd.f32 %v1502_v18, %v1296_v17  ;;  %v834_v25 = vmax.f32 %v772_v19, 0.0 }
 0x2d7   :  { %v774_v22 = vpop.f32.mrf.mxu1 }
 0x2d8   :  { %v775_v23 = vadd.f32 %v1296_v17, %v774_v22  ;;  %v837_v24 = vmax.f32 %v783_v20, 0.0 }
 0x2da   :  { %v835_v26 = vmax.f32 %v775_v23, 0.0  ;;  %v851_v29 = vpack.c.bf16 %v837_v24, %v836_v27 }
 0x2dc   :  { %v850_v28 = vpack.c.bf16 %v835_v26, %v834_v25 }
 0x2de   :  { %1531 = vmatprep.mubr.bf16.mxu0 %v850_v28 }
 0x2df   :  { %1532 = vmatmul.mubr.bf16.vlgmr.msra.gmra.mxu0 %v851_v29 }
 0x2e1   :  { %v1505_v30 = vpop.f32.mrf.mxu1 }
 0x2e2   :  { %v796_v35 = vadd.f32 %v1505_v30, %v1296_v17 }
 0x2e3   :  { %v787_v31 = vpop.f32.mrf.mxu1 }
 0x2e4   :  { %v788_v33 = vadd.f32 %v1296_v17, %v787_v31  ;;  %v840_v41 = vmax.f32 %v796_v35, 0.0 }
 0x2e5   :  { %v1506_v32 = vpop.f32.mrf.mxu1 }
 0x2e6   :  { %v799_v34 = vadd.f32 %v1506_v32, %v1296_v17  ;;  %v838_v39 = vmax.f32 %v788_v33, 0.0 }
 0x2e7   :  { %v790_v36 = vpop.f32.mrf.mxu1 }
 0x2e8   :  { %v791_v37 = vadd.f32 %v1296_v17, %v790_v36  ;;  %v841_v38 = vmax.f32 %v799_v34, 0.0 }
 0x2ea   :  { %v839_v40 = vmax.f32 %v791_v37, 0.0  ;;  %v853_v43 = vpack.c.bf16 %v841_v38, %v840_v41 }
 0x2ec   :  { %v852_v42 = vpack.c.bf16 %v839_v40, %v838_v39 }
 0x2ee   :  { %1535 = vmatprep.mubr.bf16.mxu0 %v852_v42 }
 0x2ef   :  { %1536 = vmatmul.mubr.bf16.gmra.mxu0 %v853_v43 }
 0x2f1   :  { %v1509_v44 = vpop.f32.mrf.mxu1 }
 0x2f2   :  { %v812_v50 = vadd.f32 %v1509_v44, %v1296_v17 }
 0x2f3   :  { %v803_v46 = vpop.f32.mrf.mxu1 }
 0x2f4   :  { %v804_v48 = vadd.f32 %v1296_v17, %v803_v46  ;;  %v844_v56 = vmax.f32 %v812_v50, 0.0 }
 0x2f5   :  { %v1510_v47 = vpop.f32.mrf.mxu1 }
 0x2f6   :  { %v815_v49 = vadd.f32 %v1510_v47, %v1296_v17  ;;  %v842_v54 = vmax.f32 %v804_v48, 0.0 }
 0x2f7   :  { %v806_v51 = vpop.f32.mrf.mxu1 }
 0x2f8   :  { %v807_v52 = vadd.f32 %v1296_v17, %v806_v51  ;;  %v845_v53 = vmax.f32 %v815_v49, 0.0 }
 0x2fa   :  { %v843_v55 = vmax.f32 %v807_v52, 0.0  ;;  %v855_v58 = vpack.c.bf16 %v845_v53, %v844_v56 }
 0x2fc   :  { %v854_v57 = vpack.c.bf16 %v843_v55, %v842_v54 }
 0x2fe   :  { %1539 = vmatprep.mubr.bf16.mxu0 %v854_v57 }
 0x2ff   :  { %1540 = vmatmul.mubr.bf16.gmra.mxu0 %v855_v58 }
 0x301   :  { %v1513_v59 = vpop.f32.mrf.mxu1 }
 0x302   :  { %v828_v0 = vadd.f32 %v1513_v59, %v1296_v17 }
 0x303   :  { %v819_v60 = vpop.f32.mrf.mxu1 }
 0x304   :  { %v820_v62 = vadd.f32 %v1296_v17, %v819_v60  ;;  %v848_v6 = vmax.f32 %v828_v0, 0.0 }
 0x305   :  { %v1514_v61 = vpop.f32.mrf.mxu1 }
 0x306   :  { %v831_v63 = vadd.f32 %v1514_v61, %v1296_v17  ;;  %v846_v4 = vmax.f32 %v820_v62, 0.0 }
 0x307   :  { %v822_v1 = vpop.f32.mrf.mxu1 }
 0x308   :  { %v823_v2 = vadd.f32 %v1296_v17, %v822_v1  ;;  %v849_v3 = vmax.f32 %v831_v63, 0.0 }
 0x30a   :  { %v847_v5 = vmax.f32 %v823_v2, 0.0  ;;  %v857_v8 = vpack.c.bf16 %v849_v3, %v848_v6 }
 0x30c   :  { %v856_v7 = vpack.c.bf16 %v847_v5, %v846_v4  ;;  %v1314_v5 = vld [vmem:[%s1968_s10] ss:$0 sm:$0xff]  ;;  %s1822_s10 = smov [#allocation13]  }
 0x30d   :  { %s1239_s14 = sshll.u32 %s1822_s10, 4  ;;  %s1240_s14 = int_to_ptr.vmem [resolvable:$true] %s1239_s14 }
 0x30e   :  { %1543 = vmatprep.mubr.bf16.mxu0 %v856_v7  ;;  %s1782_s15 = scalar_lea.vmem %s1240_s14, 2048  ;;  %p1787_p3 = scmp.lt.s32.totalorder %s1240_s14, %s1240_s14 }
 0x30f   :  { %1544 = vmatmul.mubr.bf16.gmra.mxu0 %v857_v8  ;;  %p1783_p2 = scmp.ne.s32.totalorder %s1240_s14, %s1782_s15  ;;  %p1788_p4 = scmp.lt.s32.totalorder %s1782_s15, %s1782_s15 }
 0x311   :  { %p1789_p5 = por %p1788_p4, %p1787_p3 }
 0x313   :  { %p1790_p6 = pnand %p1789_p5, %p1783_p2 }
 0x39f   :  { %v1533_v12 = vpop.f32.mrf.mxu0 }
 0x3a0   :  { %v972_v17 = vadd.f32 %v1533_v12, %v1305_v13 }
 0x3a1   :  { %v963_v45 = vpop.f32.mrf.mxu0 }
 0x3a2   :  { %v964_v15 = vadd.f32 %v1305_v13, %v963_v45  ;;  %v1028_v23 = vmax.f32 %v972_v17, 0.0 }
 0x3a3   :  { %v1534_v14 = vpop.f32.mrf.mxu0 }
 0x3a4   :  { %v975_v16 = vadd.f32 %v1534_v14, %v1305_v13  ;;  %v1026_v21 = vmax.f32 %v964_v15, 0.0 }
 0x3a5   :  { %v966_v18 = vpop.f32.mrf.mxu0 }
 0x3a6   :  { %v967_v19 = vadd.f32 %v1305_v13, %v966_v18  ;;  %v1029_v20 = vmax.f32 %v975_v16, 0.0 }
 0x3a8   :  { %v1027_v22 = vmax.f32 %v967_v19, 0.0  ;;  %v1043_v25 = vpack.c.bf16 %v1029_v20, %v1028_v23 }
 0x3aa   :  { %v1042_v24 = vpack.c.bf16 %v1027_v22, %v1026_v21 }
 0x3ac   :  { %1563 = vmatprep.mubr.bf16.mxu1 %v1042_v24 }
 0x3ad   :  { %1564 = vmatmul.mubr.bf16.vlgmr.msra.gmra.mxu1 %v1043_v25 }
 0x3af   :  { %v1537_v26 = vpop.f32.mrf.mxu0 }
 0x3b0   :  { %v988_v31 = vadd.f32 %v1537_v26, %v1305_v13 }
 0x3b1   :  { %v979_v27 = vpop.f32.mrf.mxu0 }
 0x3b2   :  { %v980_v29 = vadd.f32 %v1305_v13, %v979_v27  ;;  %v1032_v37 = vmax.f32 %v988_v31, 0.0 }
 0x3b3   :  { %v1538_v28 = vpop.f32.mrf.mxu0 }
 0x3b4   :  { %v991_v30 = vadd.f32 %v1538_v28, %v1305_v13  ;;  %v1030_v35 = vmax.f32 %v980_v29, 0.0 }
 0x3b5   :  { %v982_v32 = vpop.f32.mrf.mxu0 }
 0x3b6   :  { %v983_v33 = vadd.f32 %v1305_v13, %v982_v32  ;;  %v1033_v34 = vmax.f32 %v991_v30, 0.0 }
 0x3b8   :  { %v1031_v36 = vmax.f32 %v983_v33, 0.0  ;;  %v1045_v39 = vpack.c.bf16 %v1033_v34, %v1032_v37 }
 0x3ba   :  { %v1044_v38 = vpack.c.bf16 %v1031_v36, %v1030_v35 }
 0x3bc   :  { %1567 = vmatprep.mubr.bf16.mxu1 %v1044_v38 }
 0x3bd   :  { %1568 = vmatmul.mubr.bf16.gmra.mxu1 %v1045_v39 }
 0x3bf   :  { %v1541_v40 = vpop.f32.mrf.mxu0 }
 0x3c0   :  { %v1004_v46 = vadd.f32 %v1541_v40, %v1305_v13 }
 0x3c1   :  { %v995_v41 = vpop.f32.mrf.mxu0 }
 0x3c2   :  { %v996_v43 = vadd.f32 %v1305_v13, %v995_v41  ;;  %v1036_v52 = vmax.f32 %v1004_v46, 0.0 }
 0x3c3   :  { %v1542_v42 = vpop.f32.mrf.mxu0 }
 0x3c4   :  { %v1007_v44 = vadd.f32 %v1542_v42, %v1305_v13  ;;  %v1034_v50 = vmax.f32 %v996_v43, 0.0 }
 0x3c5   :  { %v998_v47 = vpop.f32.mrf.mxu0 }
 0x3c6   :  { %v999_v48 = vadd.f32 %v1305_v13, %v998_v47  ;;  %v1037_v49 = vmax.f32 %v1007_v44, 0.0 }
 0x3c8   :  { %v1035_v51 = vmax.f32 %v999_v48, 0.0  ;;  %v1047_v54 = vpack.c.bf16 %v1037_v49, %v1036_v52 }
 0x3ca   :  { %v1046_v53 = vpack.c.bf16 %v1035_v51, %v1034_v50 }
 0x3cc   :  { %1571 = vmatprep.mubr.bf16.mxu1 %v1046_v53 }
 0x3cd   :  { %1572 = vmatmul.mubr.bf16.gmra.mxu1 %v1047_v54 }
 0x3cf   :  { %v1545_v55 = vpop.f32.mrf.mxu0 }
 0x3d0   :  { %v1020_v60 = vadd.f32 %v1545_v55, %v1305_v13 }
 0x3d1   :  { %v1011_v56 = vpop.f32.mrf.mxu0 }
 0x3d2   :  { %v1012_v58 = vadd.f32 %v1305_v13, %v1011_v56  ;;  %v1040_v2 = vmax.f32 %v1020_v60, 0.0 }
 0x3d3   :  { %v1546_v57 = vpop.f32.mrf.mxu0 }
 0x3d4   :  { %v1023_v59 = vadd.f32 %v1546_v57, %v1305_v13  ;;  %v1038_v0 = vmax.f32 %v1012_v58, 0.0 }
 0x3d5   :  { %v1014_v61 = vpop.f32.mrf.mxu0 }
 0x3d6   :  { %v1015_v62 = vadd.f32 %v1305_v13, %v1014_v61  ;;  %v1041_v63 = vmax.f32 %v1023_v59, 0.0 }
 0x3d8   :  { %v1039_v1 = vmax.f32 %v1015_v62, 0.0  ;;  %v1049_v4 = vpack.c.bf16 %v1041_v63, %v1040_v2 }
 0x3da   :  { %v1048_v3 = vpack.c.bf16 %v1039_v1, %v1038_v0 }
 0x3dc   :  { %1575 = vmatprep.mubr.bf16.mxu1 %v1048_v3 }
 0x3dd   :  { %1576 = vmatmul.mubr.bf16.gmra.mxu1 %v1049_v4 }
 0x46d   :  { %v1565_v6 = vpop.f32.mrf.mxu1 }
 0x46e   :  { %v1164_v7 = vadd.f32 %v1565_v6, %v1314_v5 }
 0x46f   :  { %v1155_v8 = vpop.f32.mrf.mxu1 }
 0x470   :  { %1220 = vst [vmem:[#allocation13 + $0x10] sm:$0xff] %v1164_v7  ;;  %v1156_v9 = vadd.f32 %v1314_v5, %v1155_v8 }
 0x471   :  { %v1566_v10 = vpop.f32.mrf.mxu1 }
 0x472   :  { %1218 = vst [vmem:[#allocation13] sm:$0xff] %v1156_v9  ;;  %v1167_v11 = vadd.f32 %v1566_v10, %v1314_v5 }
 0x473   :  { %v1158_v12 = vpop.f32.mrf.mxu1 }
 0x474   :  { %1221 = vst [vmem:[#allocation13 + $0x18] sm:$0xff] %v1167_v11  ;;  %v1159_v45 = vadd.f32 %v1314_v5, %v1158_v12 }
 0x476   :  { %1219 = vst [vmem:[#allocation13 + $0x8] sm:$0xff] %v1159_v45 }
 0x47d   :  { %v1569_v13 = vpop.f32.mrf.mxu1 }
 0x47e   :  { %v1180_v14 = vadd.f32 %v1569_v13, %v1314_v5 }
 0x47f   :  { %v1171_v15 = vpop.f32.mrf.mxu1 }
 0x480   :  { %1224 = vst [vmem:[#allocation13 + $0x30] sm:$0xff] %v1180_v14  ;;  %v1172_v16 = vadd.f32 %v1314_v5, %v1171_v15 }
 0x481   :  { %v1570_v17 = vpop.f32.mrf.mxu1 }
 0x482   :  { %1222 = vst [vmem:[#allocation13 + $0x20] sm:$0xff] %v1172_v16  ;;  %v1183_v18 = vadd.f32 %v1570_v17, %v1314_v5 }
 0x483   :  { %v1174_v19 = vpop.f32.mrf.mxu1 }
 0x484   :  { %1225 = vst [vmem:[#allocation13 + $0x38] sm:$0xff] %v1183_v18  ;;  %v1175_v20 = vadd.f32 %v1314_v5, %v1174_v19 }
 0x486   :  { %1223 = vst [vmem:[#allocation13 + $0x28] sm:$0xff] %v1175_v20 }
 0x48d   :  { %v1573_v21 = vpop.f32.mrf.mxu1 }
 0x48e   :  { %v1196_v22 = vadd.f32 %v1573_v21, %v1314_v5 }
 0x48f   :  { %v1187_v23 = vpop.f32.mrf.mxu1 }
 0x490   :  { %1228 = vst [vmem:[#allocation13 + $0x50] sm:$0xff] %v1196_v22  ;;  %v1188_v24 = vadd.f32 %v1314_v5, %v1187_v23 }
 0x491   :  { %v1574_v25 = vpop.f32.mrf.mxu1 }
 0x492   :  { %1226 = vst [vmem:[#allocation13 + $0x40] sm:$0xff] %v1188_v24  ;;  %v1199_v26 = vadd.f32 %v1574_v25, %v1314_v5 }
 0x493   :  { %v1190_v27 = vpop.f32.mrf.mxu1 }
 0x494   :  { %1229 = vst [vmem:[#allocation13 + $0x58] sm:$0xff] %v1199_v26  ;;  %v1191_v28 = vadd.f32 %v1314_v5, %v1190_v27 }
 0x496   :  { %1227 = vst [vmem:[#allocation13 + $0x48] sm:$0xff] %v1191_v28 }
 0x49d   :  { %v1577_v29 = vpop.f32.mrf.mxu1 }
 0x49e   :  { %v1212_v30 = vadd.f32 %v1577_v29, %v1314_v5 }
 0x49f   :  { %v1203_v31 = vpop.f32.mrf.mxu1 }
 0x4a0   :  { %1232 = vst [vmem:[#allocation13 + $0x70] sm:$0xff] %v1212_v30  ;;  %v1204_v32 = vadd.f32 %v1314_v5, %v1203_v31 }
 0x4a1   :  { %v1578_v33 = vpop.f32.mrf.mxu1 }
 0x4a2   :  { %1230 = vst [vmem:[#allocation13 + $0x60] sm:$0xff] %v1204_v32  ;;  %v1215_v34 = vadd.f32 %v1578_v33, %v1314_v5 }
 0x4a3   :  { %v1206_v35 = vpop.f32.mrf.mxu1 }
 0x4a4   :  { %1233 = vst [vmem:[#allocation13 + $0x78] sm:$0xff] %v1215_v34  ;;  %v1207_v36 = vadd.f32 %v1314_v5, %v1206_v35 }
 0x4a6   :  { %1231 = vst [vmem:[#allocation13 + $0x68] sm:$0xff] %v1207_v36 }
 0x4a7   :  { %1793 = shalt.err (!%p1790_p6)
}
 0x4a8   :  { %1245 = dma.vmem_to_hbm [thread:$0]  %s1240_s14, 2048, %s1969_s11, [#allocation4], %s1817_s12, %s1817_s12, %s1818_s13  }
 0x4a9   :  { %1810 = dma.done.wait [#allocation4], 2048  }
 0x4aa   :  { %1811 = vsyncadd [#allocation4], 4294965248 }
 0x4ab   :  { %1249 = vsyncpa [#allocation3], 1 }
 0x4ac   :  { %1250 = vsyncpa [#allocation6], 1 }
 0x4ad   :  { %1251 = vsyncpa [#allocation9], 1 }
 0x4ae   :  { %1252 = vsyncpa [#allocation12], 1 }
 0x4af   :  { %1253 = vsyncpa [#allocation4], 1 }

</bundles_post_ra>
